<compile_context>
chip_gen: v6e
topology: v6e:2x2x1
jax: 0.10.0
libtpu: 0.0.40
codegen_flags: <defaults>
</compile_context>

<pallas_src>
import numpy as np
import jax
import jax.numpy as jnp
from jax.experimental import pallas as pl
from jax.experimental.pallas import tpu as pltpu


# Class list of the mmfashion segmentation model (deterministic, in-script).
CLASSES = ('top', 'skirt', 'leggings', 'dress', 'outer', 'pants',
           'bag', 'neckwear', 'headwear', 'eyeglass', 'belt',
           'footwear', 'hair', 'skin', 'face')


def mapping_classes(find_items):
    return_items = []
    for item in find_items:
        if item == 'up':
            return_items.extend(['top', 'dress', 'outer'])
        elif item == 'down':
            return_items.extend(['leggings', 'skirt', 'pants', 'belt', 'footwear'])
        else:
            return_items.append(item)
    return return_items


def _cdiv(a, b):
    return -(-a // b)


def _mask_union_kernel(bid_ref, nkb_ref, keep_ref, segm_ref, out_ref):
    """Union (OR) of kept detection masks, reduced over detection blocks.

    bid_ref  : SMEM (NB,)       int32  compacted block ids (kept blocks first;
                                       padding repeats the last id -> DMA skipped)
    nkb_ref  : SMEM (1,)        int32  number of blocks with >=1 kept detection
    keep_ref : SMEM (NB*TN,)    int32  per-detection keep flags (0/1), zero-padded
    segm_ref : VMEM (TN, TH, W) int8   current block of detection masks
    out_ref  : VMEM (TH, W)     f32    output tile, resident across the reduction axis
    """
    d = pl.program_id(1)            # detection-block reduction axis (last, "arbitrary")
    tn = segm_ref.shape[0]

    @pl.when(d == 0)
    def _init():
        out_ref[...] = jnp.zeros_like(out_ref)

    @pl.when(d < nkb_ref[0])
    def _accumulate():
        blk = bid_ref[d]
        acc = out_ref[...]
        for t in range(tn):                                   # static unroll
            w = (keep_ref[blk * tn + t] > 0).astype(jnp.float32)   # scalar gate
            acc = jnp.maximum(acc, w * (segm_ref[t] != 0).astype(jnp.float32))
        out_ref[...] = acc


def mask_union(segms, keep, *, tn=8):
    """segms: (N, H, W) 1-byte masks, keep: (N,) int32 -> (H, W) float32 union."""
    N, H, W = segms.shape
    if N == 0:
        return jnp.zeros((H, W), jnp.float32)

    # Lane-dense layout: pad width to a multiple of 128 (no-op when aligned).
    if W % 128 != 0:
        Wp = _cdiv(W, 128) * 128
        segms = jnp.pad(segms, ((0, 0), (0, 0), (0, Wp - W)))
    else:
        Wp = W

    TN = max(1, min(tn, N))                 # detections per grid step
    NB = _cdiv(N, TN)                       # detection blocks
    TH = H if H <= 128 else 128             # row tile (full H, or multiple of 8)
    HT = _cdiv(H, TH)

    # Compact the reduction to blocks that contain at least one kept detection.
    keep_pad = jnp.zeros((NB * TN,), jnp.int32).at[:N].set(keep.astype(jnp.int32))
    blk_keep = keep_pad.reshape(NB, TN).max(axis=1) > 0
    nkb = jnp.sum(blk_keep.astype(jnp.int32))
    order = jnp.argsort(jnp.logical_not(blk_keep), stable=True)   # kept blocks first
    last_kept = order[jnp.maximum(nkb - 1, 0)]
    block_ids = jnp.where(jnp.arange(NB) < nkb, order, last_kept).astype(jnp.int32)
    nkb_arr = jnp.reshape(nkb, (1,)).astype(jnp.int32)

    out = pl.pallas_call(
        _mask_union_kernel,
        out_shape=jax.ShapeDtypeStruct((H, Wp), jnp.float32),
        grid_spec=pltpu.PrefetchScalarGridSpec(
            num_scalar_prefetch=3,                 # block ids / kept count / keep flags
            grid=(HT, NB),                         # rows parallel, detections reduced
            in_specs=[pl.BlockSpec(
                (TN, TH, Wp), lambda h, d, bid, nkb, kp: (bid[d], h, 0))],
            out_specs=pl.BlockSpec(
                (TH, Wp), lambda h, d, bid, nkb, kp: (h, 0)),
        ),
        compiler_params=pltpu.CompilerParams(
            dimension_semantics=("parallel", "arbitrary")),
    )(block_ids, nkb_arr, keep_pad, segms)

    return out[:, :W]


def fashion_inference_forward(image_array, segms, scores, labels,
                              find_items, score_thr=0.3, tn=8):
    """JAX/Pallas equivalent of FashionInference.forward's computable part.

    image_array : (H_img, W_img, 3)  raw BGR image
    segms       : (N, H, W)          decoded per-detection binary masks (1-byte dtype)
    scores      : (N,)               detection scores (last column of bboxes)
    labels      : (N,) int32         per-detection class indices
    """
    # TODO(synk): self.seg_model (mmdet detector built from config+checkpoint), the
    # mmcv test pipeline (incl. LoadImage's BGR->RGB flip which only feeds that
    # detector) and maskUtils.decode have no self-contained Pallas equivalent; their
    # outputs (segms/scores/labels) are taken as inputs instead of being recomputed.
    del image_array

    N, H, W = segms.shape
    if N == 0:                                     # no detections -> all-zero mask
        return jnp.zeros((1, 1, H, W), jnp.float32)

    # Keep masks in a 1-byte dtype; the kernel is HBM-bandwidth bound.
    if jnp.dtype(segms.dtype).itemsize != 1:
        segms = (segms != 0).astype(jnp.int8)

    wanted = mapping_classes(find_items)
    class_keep = jnp.array([1 if c in wanted else 0 for c in CLASSES],
                           dtype=jnp.int32)
    keep = ((scores > score_thr) & (class_keep[labels] > 0)).astype(jnp.int32)

    mask = mask_union(segms, keep, tn=tn)          # (H, W) in {0.0, 1.0}
    return mask[None, None]                        # (1, 1, H, W) == torch.tensor(mask>0).float()[None,None]


if __name__ == "__main__":
    key = jax.random.PRNGKey(0)
    k_img, k_segm = jax.random.split(key, 2)

    N, H, W = 12, 16, 128
    image = jax.random.uniform(k_img, (H, W, 3), dtype=jnp.float32)          # raw BGR image
    segms = (jax.random.uniform(k_segm, (N, H, W)) > 0.5).astype(jnp.int8)   # decoded masks
    # Deterministic scores / labels that exercise both kept and rejected detections.
    scores = jnp.array([0.90, 0.20, 0.80, 0.95, 0.50, 0.10,
                        0.70, 0.60, 0.40, 0.35, 0.25, 0.85], dtype=jnp.float32)
    labels = jnp.array([0, 3, 4, 1, 5, 11, 2, 10, 12, 13, 0, 6], dtype=jnp.int32)

    out = fashion_inference_forward(image, segms, scores, labels,
                                    find_items=['up', 'skirt'],
                                    score_thr=0.3, tn=4)
    out = jax.block_until_ready(out)

    # Reference: plain-numpy mirror of the PyTorch post-processing loop.
    wanted = mapping_classes(['up', 'skirt'])
    keep_np = (np.asarray(scores) > 0.3) & np.array(
        [CLASSES[int(l)] in wanted for l in np.asarray(labels)])
    if keep_np.any():
        ref = (np.asarray(segms)[keep_np].sum(axis=0) > 0).astype(np.float32)
    else:
        ref = np.zeros((H, W), np.float32)
    assert out.shape == (1, 1, H, W)
    np.testing.assert_allclose(np.asarray(out)[0, 0], ref)

    print("KERNEL_OK")
</pallas_src>

<mosaic_0001>
module attributes {stable_mosaic.version = 11 : i64} {
  func.func @_mask_union_kernel(%arg0: i32, %arg1: i32, %arg2: memref<3xi32, #tpu.memory_space<smem>>, %arg3: memref<1xi32, #tpu.memory_space<smem>>, %arg4: memref<12xi32, #tpu.memory_space<smem>>, %arg5: memref<4x16x128xi8, #tpu.memory_space<vmem>>, %arg6: memref<16x128xf32, #tpu.memory_space<vmem>>) attributes {dimension_semantics = [#tpu.dimension_semantics<parallel>, #tpu.dimension_semantics<arbitrary>], iteration_bounds = array<i64: 1, 3>, scalar_prefetch = 3 : i64, scratch_operands = 0 : i64, tpu.core_type = #tpu.core_type<tc>, window_params = [{transform_indices = @transform_0, window_bounds = array<i64: 4, 16, 128>}, {transform_indices = @transform_1, window_bounds = array<i64: 16, 128>}]} {
    %c0_i32 = arith.constant 0 : i32
    %0 = arith.cmpi eq, %arg1, %c0_i32 : i32
    %1 = arith.extui %0 : i1 to i32
    %c0_i32_0 = arith.constant 0 : i32
    %2 = arith.cmpi ne, %1, %c0_i32_0 : i32
    scf.if %2 {
      %cst = arith.constant 0.000000e+00 : f32
      %7 = vector.broadcast %cst : f32 to vector<16x128xf32>
      %c0_2 = arith.constant 0 : index
      %c0_3 = arith.constant 0 : index
      %8 = vector.load %arg6[%c0_2, %c0_3] : memref<16x128xf32, #tpu.memory_space<vmem>>, vector<16x128xf32>
      tpu.vector_store %arg6[%c0_2, %c0_3], %7 {strides = array<i32>} : memref<16x128xf32, #tpu.memory_space<vmem>>, vector<16x128xf32>,
    } else {
    }
    %c0 = arith.constant 0 : index
    %3 = memref.load %arg3[%c0] : memref<1xi32, #tpu.memory_space<smem>>
    %4 = arith.cmpi slt, %arg1, %3 : i32
    %5 = arith.extui %4 : i1 to i32
    %c0_i32_1 = arith.constant 0 : i32
    %6 = arith.cmpi ne, %5, %c0_i32_1 : i32
    scf.if %6 {
      %7 = arith.index_cast %arg1 : i32 to index
      %8 = memref.load %arg2[%7] : memref<3xi32, #tpu.memory_space<smem>>
      %c0_2 = arith.constant 0 : index
      %c0_3 = arith.constant 0 : index
      %9 = vector.load %arg6[%c0_2, %c0_3] : memref<16x128xf32, #tpu.memory_space<vmem>>, vector<16x128xf32>
      %c4_i32 = arith.constant 4 : i32
      %10 = arith.muli %8, %c4_i32 : i32
      %c0_i32_4 = arith.constant 0 : i32
      %11 = arith.addi %10, %c0_i32_4 : i32
      %12 = arith.index_cast %11 : i32 to index
      %13 = memref.load %arg4[%12] : memref<12xi32, #tpu.memory_space<smem>>
      %c0_i32_5 = arith.constant 0 : i32
      %14 = arith.cmpi sgt, %13, %c0_i32_5 : i32
      %15 = arith.extui %14 : i1 to i32
      %16 = arith.sitofp %15 : i32 to f32
      %c0_6 = arith.constant 0 : index
      %c0_7 = arith.constant 0 : index
      %c0_8 = arith.constant 0 : index
      %17 = vector.load %arg5[%c0_6, %c0_7, %c0_8] : memref<4x16x128xi8, #tpu.memory_space<vmem>>, vector<1x16x128xi8>
      %18 = vector.shape_cast %17 : vector<1x16x128xi8> to vector<16x128xi8>
      %c0_i8 = arith.constant 0 : i8
      %19 = vector.broadcast %c0_i8 : i8 to vector<16x128xi8>
      %20 = arith.cmpi ne, %18, %19 : vector<16x128xi8>
      %21 = arith.extui %20 : vector<16x128xi1> to vector<16x128xi32>
      %22 = arith.sitofp %21 : vector<16x128xi32> to vector<16x128xf32>
      %23 = vector.broadcast %16 : f32 to vector<16x128xf32>
      %24 = arith.mulf %23, %22 : vector<16x128xf32>
      %25 = arith.maximumf %9, %24 : vector<16x128xf32>
      %c4_i32_9 = arith.constant 4 : i32
      %26 = arith.muli %8, %c4_i32_9 : i32
      %c1_i32 = arith.constant 1 : i32
      %27 = arith.addi %26, %c1_i32 : i32
      %28 = arith.index_cast %27 : i32 to index
      %29 = memref.load %arg4[%28] : memref<12xi32, #tpu.memory_space<smem>>
      %c0_i32_10 = arith.constant 0 : i32
      %30 = arith.cmpi sgt, %29, %c0_i32_10 : i32
      %31 = arith.extui %30 : i1 to i32
      %32 = arith.sitofp %31 : i32 to f32
      %c1 = arith.constant 1 : index
      %c0_11 = arith.constant 0 : index
      %c0_12 = arith.constant 0 : index
      %33 = vector.load %arg5[%c1, %c0_11, %c0_12] : memref<4x16x128xi8, #tpu.memory_space<vmem>>, vector<1x16x128xi8>
      %34 = vector.shape_cast %33 : vector<1x16x128xi8> to vector<16x128xi8>
      %c0_i8_13 = arith.constant 0 : i8
      %35 = vector.broadcast %c0_i8_13 : i8 to vector<16x128xi8>
      %36 = arith.cmpi ne, %34, %35 : vector<16x128xi8>
      %37 = arith.extui %36 : vector<16x128xi1> to vector<16x128xi32>
      %38 = arith.sitofp %37 : vector<16x128xi32> to vector<16x128xf32>
      %39 = vector.broadcast %32 : f32 to vector<16x128xf32>
      %40 = arith.mulf %39, %38 : vector<16x128xf32>
      %41 = arith.maximumf %25, %40 : vector<16x128xf32>
      %c4_i32_14 = arith.constant 4 : i32
      %42 = arith.muli %8, %c4_i32_14 : i32
      %c2_i32 = arith.constant 2 : i32
      %43 = arith.addi %42, %c2_i32 : i32
      %44 = arith.index_cast %43 : i32 to index
      %45 = memref.load %arg4[%44] : memref<12xi32, #tpu.memory_space<smem>>
      %c0_i32_15 = arith.constant 0 : i32
      %46 = arith.cmpi sgt, %45, %c0_i32_15 : i32
      %47 = arith.extui %46 : i1 to i32
      %48 = arith.sitofp %47 : i32 to f32
      %c2 = arith.constant 2 : index
      %c0_16 = arith.constant 0 : index
      %c0_17 = arith.constant 0 : index
      %49 = vector.load %arg5[%c2, %c0_16, %c0_17] : memref<4x16x128xi8, #tpu.memory_space<vmem>>, vector<1x16x128xi8>
      %50 = vector.shape_cast %49 : vector<1x16x128xi8> to vector<16x128xi8>
      %c0_i8_18 = arith.constant 0 : i8
      %51 = vector.broadcast %c0_i8_18 : i8 to vector<16x128xi8>
      %52 = arith.cmpi ne, %50, %51 : vector<16x128xi8>
      %53 = arith.extui %52 : vector<16x128xi1> to vector<16x128xi32>
      %54 = arith.sitofp %53 : vector<16x128xi32> to vector<16x128xf32>
      %55 = vector.broadcast %48 : f32 to vector<16x128xf32>
      %56 = arith.mulf %55, %54 : vector<16x128xf32>
      %57 = arith.maximumf %41, %56 : vector<16x128xf32>
      %c4_i32_19 = arith.constant 4 : i32
      %58 = arith.muli %8, %c4_i32_19 : i32
      %c3_i32 = arith.constant 3 : i32
      %59 = arith.addi %58, %c3_i32 : i32
      %60 = arith.index_cast %59 : i32 to index
      %61 = memref.load %arg4[%60] : memref<12xi32, #tpu.memory_space<smem>>
      %c0_i32_20 = arith.constant 0 : i32
      %62 = arith.cmpi sgt, %61, %c0_i32_20 : i32
      %63 = arith.extui %62 : i1 to i32
      %64 = arith.sitofp %63 : i32 to f32
      %c3 = arith.constant 3 : index
      %c0_21 = arith.constant 0 : index
      %c0_22 = arith.constant 0 : index
      %65 = vector.load %arg5[%c3, %c0_21, %c0_22] : memref<4x16x128xi8, #tpu.memory_space<vmem>>, vector<1x16x128xi8>
      %66 = vector.shape_cast %65 : vector<1x16x128xi8> to vector<16x128xi8>
      %c0_i8_23 = arith.constant 0 : i8
      %67 = vector.broadcast %c0_i8_23 : i8 to vector<16x128xi8>
      %68 = arith.cmpi ne, %66, %67 : vector<16x128xi8>
      %69 = arith.extui %68 : vector<16x128xi1> to vector<16x128xi32>
      %70 = arith.sitofp %69 : vector<16x128xi32> to vector<16x128xf32>
      %71 = vector.broadcast %64 : f32 to vector<16x128xf32>
      %72 = arith.mulf %71, %70 : vector<16x128xf32>
      %73 = arith.maximumf %57, %72 : vector<16x128xf32>
      %c0_24 = arith.constant 0 : index
      %c0_25 = arith.constant 0 : index
      %74 = vector.load %arg6[%c0_24, %c0_25] : memref<16x128xf32, #tpu.memory_space<vmem>>, vector<16x128xf32>
      tpu.vector_store %arg6[%c0_24, %c0_25], %73 {strides = array<i32>} : memref<16x128xf32, #tpu.memory_space<vmem>>, vector<16x128xf32>,
    } else {
    }
    return
  }
  func.func @transform_0(%arg0: i32, %arg1: i32, %arg2: memref<3xi32, #tpu.memory_space<smem>>, %arg3: memref<1xi32, #tpu.memory_space<smem>>, %arg4: memref<12xi32, #tpu.memory_space<smem>>) -> (i32, i32, i32) {
    %0 = arith.index_cast %arg1 : i32 to index
    %1 = memref.load %arg2[%0] : memref<3xi32, #tpu.memory_space<smem>>
    %c0_i32 = arith.constant 0 : i32
    %c0_i32_0 = arith.constant 0 : i32
    return %1, %arg0, %c0_i32 : i32, i32, i32
  }
  func.func @transform_1(%arg0: i32, %arg1: i32, %arg2: memref<3xi32, #tpu.memory_space<smem>>, %arg3: memref<1xi32, #tpu.memory_space<smem>>, %arg4: memref<12xi32, #tpu.memory_space<smem>>) -> (i32, i32) {
    %c0_i32 = arith.constant 0 : i32
    %c0_i32_0 = arith.constant 0 : i32
    return %arg0, %c0_i32 : i32, i32
  }
}

</mosaic_0001>

<bundles_post_ra>
// kernel: tpu_custom_call.1
= control target key start
LH: loop header
LB: loop body
LE: loop exit
PB: predicated region body
PF: predicated region fallthrough
CT: control target
= control target key end

     0   :  { %s797_s0 = inlined_call_operand.vmem [shape: s32[3], index: 0, kind: input, shape index: {}]   ;;  %s798_s1 = inlined_call_operand.<no memory space> [shape: s32[1], index: 1, kind: input, shape index: {}]   ;;  %s799_s3 = inlined_call_operand.hbm [shape: s8[12,16,128], index: 3, kind: input, shape index: {}]   ;;  %s800_s4 = inlined_call_operand.hbm [shape: f32[16,128], index: 4, kind: output, shape index: {}]   ;;  %s801_s2 = inlined_call_operand.vmem [shape: s32[12], index: 2, kind: input, shape index: {}]  }
   0x1   :  { %s9_s17 = sshll.u32 %s797_s0, 4  ;;  %13 = sst [smem:[#allocation4]] %s798_s1  ;;  %s10_s17 = int_to_ptr.vmem [resolvable:$true] %s9_s17 }
   0x2   :  { %s14_s22 = sshll.u32 %s801_s2, 4  ;;  %s466_s23 = scalar_lea.vmem %s10_s17, 16  ;;  %s15_s22 = int_to_ptr.vmem [resolvable:$true] %s14_s22 }
   0x3   :  { %p467_p0 = scmp.ne.s32.totalorder %s10_s17, %s466_s23  ;;  %p471_p1 = scmp.lt.s32.totalorder %s10_s17, %s10_s17 }
   0x4   :  { %p472_p2 = scmp.lt.s32.totalorder %s466_s23, %s466_s23 }
   0x6   :  { %p473_p3 = por %p472_p2, %p471_p1 }
   0x8   :  { %p474_p4 = pnand %p473_p3, %p467_p0 }
   0xa   :  { %477 = shalt.err (!%p474_p4)  }
   0xb   :  { %s600_s24 = smov [#allocation3]   ;;  %s478_s0 = scalar_lea.vmem %s15_s22, 16 }
   0xc   :  { %12 = dma.vmem_to_smem %s10_s17, 16, %s600_s24, [#allocation2] }
   0xd   :  { %p479_p5 = scmp.ne.s32.totalorder %s15_s22, %s478_s0  ;;  %p483_p6 = scmp.lt.s32.totalorder %s15_s22, %s15_s22 }
   0xe   :  { %p484_p7 = scmp.lt.s32.totalorder %s478_s0, %s478_s0 }
  0x10   :  { %p485_p8 = por %p484_p7, %p483_p6 }
  0x12   :  { %p486_p9 = pnand %p485_p8, %p479_p5 }
  0x14   :  { %489 = shalt.err (!%p486_p9)  }
  0x15   :  { %s601_s1 = smov [#allocation5]  }
  0x16   :  { %17 = dma.vmem_to_smem %s15_s22, 16, %s601_s1, [#allocation2] }
  0x17   :  { %566 = dma.done.wait [#allocation2], 32 }
  0x18   :  { %567 = vsyncadd [#allocation2], 4294967264 }
  0x19   :  { %19 = sfence }
  0x1a   :  { %20 = vsyncpa [#allocation7], 0 }
  0x1b   :  { %22 = vsyncpa [#allocation7 + $0x1], 0 }
  0x1c   :  { %23 = vsyncpa [#allocation8], 0  ;;  %s645_s2 = smov 0   ;;  %s647_s25 = smov 0  }
  0x1d   :  { %s649_s26 = smov 0   ;;  %s651_s27 = smov 0  }
  0x1e   :  { %s653_s28 = smov 0   ;;  %s655_s29 = smov 0  }
  0x1f LB: > { %s38_s30 = sadd.s32 1, %s594_s28  ;;  %s359_s5 = sadd.s32 4294967295, %s598_s29   ;;  %s598_s29 = sphi %s655_s29, %s29_s29   ;;  %s594_s28 = sphi %s653_s28, %s815_s28   ;;  %s590_s27 = sphi %s651_s27, %s814_s27   ;;  %s586_s26 = sphi %s649_s26, %s813_s26   ;;  %s582_s25 = sphi %s647_s25, %s812_s25   ;;  %s578_s2 = sphi %s645_s2, %s811_s2  }
  0x20   : > { %p39_p10 = scmp.ge.s32.totalorder %s38_s30, 3  ;;  %s45_s6 = sld [smem:[#allocation3 + %s594_s28]] }
  0x21   : > { %p59_p11 = scmp.ne.s32.totalorder %s586_s26, %s582_s25  ;;  %p60_p12 = scmp.eq.s32.totalorder %s598_s29, 0 }
  0x22   : > { %s817_s30 = smov (%p39_p10, %s38_s30), 0  ;;  %p65_p13 = scmp.ne.s32.totalorder %s582_s25, %s578_s2 }
  0x23   : > { %s46_s7 = sld [smem:[#allocation3 + %s817_s30]]  ;;  %p66_p0 = scmp.eq.s32.totalorder %s359_s5, 0 }
  0x24   : > { %s115_s9 = sand.u32 1, %s586_s26   ;;  %p61_p2 = por %p60_p12, %p59_p11 }
  0x25   : > { %p685_p1 = por %p66_p0, %p65_p13  ;;  %s52_s10 = sadd.s32 1, %s586_s26 }
  0x26   : > { %p405_p3 = scmp.lt.s32.totalorder %s598_s29, 3  ;;  %s362_s12 = sshll.u32 %s115_s9, 4 }
  0x27   : > { %s803_s8 = scalar_select %p685_p1, 1, 0 }
  0x28   : > { %p692_p5 = pnand %p405_p3, %p61_p2  ;;  %p366_p6 = scmp.ge.s32.totalorder %s598_s29, 1 }
  0x29   : > { %s47_s11 = ssub.s32 %s45_s6, %s46_s7  ;;  %p138_p7 = scmp.lt.s32.totalorder %s598_s29, 4 }
  0x2a   : > { %p50_p4 = scmp.eq.s32.totalorder %s47_s11, 0  ;;  %s119_s18 = scalar_lea.vmem [#allocation6], %s362_s12 }
  0x2b   : > { %s391_s14 = scalar_select %p61_p2, [#allocation3], [#allocation10] }
  0x2c   : > { %s697_s15 = scalar_select %p50_p4, %s586_s26, %s52_s10  }
  0x2d   : > { %s392_s16 = scalar_select %p61_p2, %s594_s28, 0 }
  0x2e   : > { %s819_s14 = smov (!%p405_p3, %s391_s14), [#allocation11]  ;;  %s130_s19 = sshll.u32 %s119_s18, 4  ;;  %s706_s19 = int_to_ptr.vmem [resolvable:$true] %s130_s19 }
  0x2f   : > { %s821_s16 = smov (!%p405_p3, %s392_s16), 0  ;;  %p702_p8 = pnand %p366_p6, %p138_p7 }
  0x30   : > { %s120_s17 = sld [smem:[%s819_s14 + %s821_s16]]  ;;  %s713_s0 = scalar_lea.sflag [#allocation7], %s115_s9 }
  0x31   : > { %s805_s20 = scalar_select %p702_p8, 1, 0 }
  0x32   : > { %p492_p10 = pneg %p692_p5  ;;  %s495_s7 = scalar_lea.hbm %s799_s3, 768 }
  0x36   : > { %s390_s21 = sshll.u32 %s120_s17, 8 }
  0x37   : > { %s711_s24 = scalar_lea.hbm %s799_s3, %s390_s21 }
  0x38   : > { %s490_s1 = scalar_lea.hbm %s711_s24, 256  ;;  %p496_p13 = scmp.lt.s32.totalorder %s711_s24, %s799_s3 }
  0x39   : > { %p491_p9 = scmp.ne.s32.totalorder %s711_s24, %s490_s1  ;;  %p497_p0 = scmp.lt.s32.totalorder %s495_s7, %s490_s1 }
  0x3b   : > { %p493_p11 = pnand %p492_p10, %p491_p9  ;;  %p498_p2 = por %p497_p0, %p496_p13 }
  0x3d   : > { %p494_p12 = pneg %p493_p11 }
  0x3f   : > { %p499_p3 = pnand %p498_p2, %p494_p12 }
  0x41   : > { %502 = shalt.err (!%p499_p3)
}
  0x42   : > { %s503_s9 = scalar_lea.vmem %s706_s19, 256  ;;  %s602_s12 = smov [#allocation6]  }
  0x43   : > { %p504_p4 = scmp.ne.s32.totalorder %s706_s19, %s503_s9  ;;  %s508_s14 = sshll.u32 %s602_s12, 4  ;;  %s509_s14 = int_to_ptr.vmem [resolvable:$false] %s508_s14 }
  0x44   : > { %s510_s16 = scalar_lea.vmem %s509_s14, 512  ;;  %p511_p9 = scmp.lt.s32.totalorder %s706_s19, %s509_s14 }
  0x45   : > { %p506_p6 = pnand %p504_p4, %p492_p10  ;;  %p512_p11 = scmp.lt.s32.totalorder %s510_s16, %s503_s9 }
  0x47   : > { %p507_p7 = pneg %p506_p6  ;;  %p513_p1 = por %p512_p11, %p511_p9 }
  0x49   : > { %p514_p8 = pnand %p513_p1, %p507_p7 }
  0x4b   : > { %517 = shalt.err (!%p514_p8)
}
  0x4c   : > { %s603_s17 = smov 32   ;;  %s604_s18 = smov 2  }
  0x4d   : > { %404 = dma.hbm_to_vmem [thread:$0]  (!%p692_p5), %s711_s24, 256, %s706_s19, %s713_s0, %s603_s17, %s603_s17, %s604_s18  }
  0x4e   : > { %p806_p10 = scmp.ne.s32.totalorder %s805_s20, 0 }
  0x4f   : > { %s144_s21 = sand.u32 (!%p806_p10), 1, %s582_s25   ;;  %p807_p12 = scmp.ne.s32.totalorder (!%p806_p10), %s803_s8, 0 }
  0x50   : > { %142 = sbr.rel (%p806_p10) target bundleno = 152 (0x98), region = 24  ;;  %s367_s22 = sshll.u32 (!%p806_p10), %s144_s21, 4 }
  0x51   : > { %s145_s23 = scalar_lea.sflag (!%p806_p10), [#allocation7], %s144_s21  ;;  %s148_s1 = scalar_lea.vmem (!%p806_p10), [#allocation6], %s367_s22 }
  0x55   : > { %569 = dma.done.wait (%p807_p12), %s145_s23, 256  }
  0x56   : > { %571 = vsyncadd (%p807_p12), %s145_s23, 4294967040  ;;  %p368_p1 = scmp.ne.s32.totalorder %s590_s27, 0 }
  0x58   : > { %171 = sbr.rel (%p368_p1) target bundleno = 95 (0x5f), region = 32 }
  0x5d   : > { %v605_v0 = vmov 0.0  }
  0x5e   : > { %172 = vst [vmem:[#allocation9] sm:$0xff] %v605_v0  ;;  %173 = vst [vmem:[#allocation9 + $0x8] sm:$0xff] %v605_v0 }
  0x5f PF: > { %s174_s13 = sld [smem:[#allocation4]] }
  0x65   : > { %p369_p5 = scmp.ge.s32.totalorder %s590_s27, %s174_s13 }
  0x66   : > { %s179_s19 = sld [smem:[#allocation3 + %s590_s27]] (!%p369_p5) }
  0x67   : > { %178 = sbr.rel (%p369_p5) target bundleno = 136 (0x88), region = 36 }
  0x6c   : > { %v187_v1 = vld [vmem:[%s148_s1] sm:$0x3]  ;;  %v373_v2 = vld [vmem:[%s148_s1 + $0x4] sm:$0x3]  ;;  %v188_v3 = vld [vmem:[%s148_s1 + $0x2] sm:$0x3] }
  0x6d   : > { %vm189_vm0 = vnez %v187_v1  ;;  %vm190_vm1 = vnez %v188_v3  ;;  %v374_v4 = vld [vmem:[%s148_s1 + $0x6] sm:$0x3]  ;;  %vm214_vm2 = vnez %v373_v2  ;;  %v377_v5 = vld [vmem:[%s148_s1 + $0x8] sm:$0x3]  ;;  %v381_v6 = vld [vmem:[%s148_s1 + $0xc] sm:$0x3] }
  0x6e   : > { %vm215_vm3 = vnez %v374_v4  ;;  %s370_s8 = sshll.u32 %s179_s19, 2  ;;  %v378_v7 = vld [vmem:[%s148_s1 + $0xa] sm:$0x3]  ;;  %v382_v8 = vld [vmem:[%s148_s1 + $0xe] sm:$0x3]  ;;  %v606_v9 = vmov 0   ;;  %vm239_vm4 = vnez %v377_v5  ;;  %vm264_vm5 = vnez %v381_v6 }
  0x6f   : > { %s744_s20 = sld [smem:[#allocation5 + %s370_s8]]  ;;  %v191_v10 = vsel %vm189_vm0, 16843009, %v606_v9  ;;  %s206_s24 = sadd.s32 1, %s370_s8  ;;  %v192_v11 = vsel %vm190_vm1, 16843009, %v606_v9  ;;  %vm240_vm6 = vnez %v378_v7  ;;  %vm265_vm7 = vnez %v382_v8 }
  0x70   : > { %s746_s27 = sld [smem:[#allocation5 + %s206_s24]]  ;;  %v216_v12 = vsel %vm214_vm2, 16843009, %v606_v9  ;;  %s231_s0 = sadd.s32 2, %s370_s8  ;;  %v217_v13 = vsel %vm215_vm3, 16843009, %v606_v9  ;;  %v193_v14 = vunpack.c.0.s8 %v191_v10  ;;  %v194_v15 = vunpack.c.0.s8 %v192_v11 }
  0x71   : > { %s748_s2 = sld [smem:[#allocation5 + %s231_s0]]  ;;  %s256_s6 = sadd.s32 3, %s370_s8  ;;  %v218_v16 = vunpack.c.0.s8 %v216_v12  ;;  %v241_v17 = vsel %vm239_vm4, 16843009, %v606_v9  ;;  %v266_v18 = vsel %vm264_vm5, 16843009, %v606_v9  ;;  %v219_v19 = vunpack.c.0.s8 %v217_v13 }
  0x72   : > { %s750_s7 = sld [smem:[#allocation5 + %s256_s6]]  ;;  %v242_v20 = vsel %vm240_vm6, 16843009, %v606_v9  ;;  %v267_v21 = vsel %vm265_vm7, 16843009, %v606_v9  ;;  %vm195_vm8 = vcmp.ne.s32.totalorder %v193_v14, 0  ;;  %v243_v22 = vunpack.c.0.s8 %v241_v17 }
  0x73   : > { %v268_v23 = vunpack.c.0.s8 %v266_v18  ;;  %vm196_vm9 = vcmp.ne.s32.totalorder %v194_v15, 0  ;;  %vm220_vm10 = vcmp.ne.s32.totalorder %v218_v16, 0  ;;  %vm221_vm11 = vcmp.ne.s32.totalorder %v219_v19, 0  ;;  %v180_v32 = vld [vmem:[#allocation9] sm:$0xff]  ;;  %v181_v34 = vld [vmem:[#allocation9 + $0x8] sm:$0xff] }
  0x74   : > { %v244_v24 = vunpack.c.0.s8 %v242_v20  ;;  %v269_v25 = vunpack.c.0.s8 %v267_v21  ;;  %v607_v26 = vmov 0.0   ;;  %vm755_vm12 = vcmp.ne.s32.totalorder %v243_v22, 0 }
  0x75   : > { %p184_p8 = scmp.gt.s32.totalorder %s744_s20, 0  ;;  %v371_v27 = vsel %vm195_vm8, 1.0, %v607_v26  ;;  %v372_v28 = vsel %vm196_vm9, 1.0, %v607_v26  ;;  %v375_v29 = vsel %vm220_vm10, 1.0, %v607_v26  ;;  %vm270_vm13 = vcmp.ne.s32.totalorder %v268_v23, 0 }
  0x76   : > { %p208_p13 = scmp.gt.s32.totalorder %s746_s27, 0  ;;  %v376_v31 = vsel %vm221_vm11, 1.0, %v607_v26  ;;  %vm246_vm14 = vcmp.ne.s32.totalorder %v244_v24, 0  ;;  %vm271_vm15 = vcmp.ne.s32.totalorder %v269_v25, 0  ;;  %v379_v39 = vsel %vm755_vm12, 1.0, %v607_v26 }
  0x77   : > { %s185_s10 = scalar_select %p184_p8, 1, 0  ;;  %v383_v40 = vsel %vm270_vm13, 1.0, %v607_v26  ;;  %v380_v44 = vsel %vm246_vm14, 1.0, %v607_v26  ;;  %v384_v45 = vsel %vm271_vm15, 1.0, %v607_v26 }
  0x78   : > { %s209_s11 = scalar_select %p208_p13, 1, 0 }
  0x79   : > { %s186_s9 = scvt.s32.f32 %s185_s10  ;;  %p233_p0 = scmp.gt.s32.totalorder %s748_s2, 0 }
  0x7a   : > { %s210_s12 = scvt.s32.f32 %s209_s11  ;;  %p258_p2 = scmp.gt.s32.totalorder %s750_s7, 0 }
  0x7b   : > { %v201_v33 = vstv %s186_s9  ;;  %s234_s14 = scalar_select %p233_p0, 1, 0 }
  0x7c   : > { %v202_v35 = vmul.f32 %v371_v27, %v201_v33  ;;  %v226_v36 = vstv %s210_s12  ;;  %s259_s16 = scalar_select %p258_p2, 1, 0  ;;  %v203_v37 = vmul.f32 %v372_v28, %v201_v33 }
  0x7d   : > { %v227_v38 = vmul.f32 %v375_v29, %v226_v36  ;;  %s235_s17 = scvt.s32.f32 %s234_s14  ;;  %v228_v41 = vmul.f32 %v376_v31, %v226_v36 }
  0x7e   : > { %v204_v42 = vmax.f32 %v180_v32, %v202_v35  ;;  %s260_s18 = scvt.s32.f32 %s259_s16  ;;  %v205_v43 = vmax.f32 %v181_v34, %v203_v37 }
  0x7f   : > { %v251_v46 = vstv %s235_s17 }
  0x80   : > { %v229_v47 = vmax.f32 %v204_v42, %v227_v38  ;;  %v252_v48 = vmul.f32 %v379_v39, %v251_v46  ;;  %v276_v49 = vstv %s260_s18  ;;  %v230_v50 = vmax.f32 %v205_v43, %v228_v41 }
  0x81   : > { %v277_v51 = vmul.f32 %v383_v40, %v276_v49  ;;  %v253_v52 = vmul.f32 %v380_v44, %v251_v46  ;;  %v278_v53 = vmul.f32 %v384_v45, %v276_v49 }
  0x82   : > { %v254_v54 = vmax.f32 %v229_v47, %v252_v48 }
  0x83   : > { %v255_v55 = vmax.f32 %v230_v50, %v253_v52 }
  0x84   : > { %v279_v56 = vmax.f32 %v254_v54, %v277_v51 }
  0x85   : > { %v280_v57 = vmax.f32 %v255_v55, %v278_v53 }
  0x86   : > { %281 = vst [vmem:[#allocation9] sm:$0xff] %v279_v56 }
  0x87   : > { %282 = vst [vmem:[#allocation9 + $0x8] sm:$0xff] %v280_v57 }
  0x88 PF: > { %p764_p3 = scmp.eq.s32.totalorder %s359_s5, 2  ;;  %s608_s22 = smov [#allocation9]  }
  0x89   : > { %s292_s23 = sshll.u32 %s608_s22, 4  ;;  %s293_s23 = int_to_ptr.vmem [resolvable:$true] %s292_s23 }
  0x8a   : > { %s518_s1 = scalar_lea.vmem %s293_s23, 256  ;;  %p525_p9 = scmp.lt.s32.totalorder %s293_s23, %s293_s23 }
  0x8b   : > { %p519_p4 = scmp.ne.s32.totalorder %s293_s23, %s518_s1  ;;  %p526_p11 = scmp.lt.s32.totalorder %s518_s1, %s518_s1 }
  0x8d   : > { %p520_p6 = pnand %p519_p4, %p764_p3  ;;  %p527_p10 = por %p526_p11, %p525_p9 }
  0x8f   : > { %p521_p7 = pneg %p520_p6 }
  0x91   : > { %p528_p12 = pnand %p527_p10, %p521_p7 }
  0x93   : > { %531 = shalt.err (!%p528_p12)
}
  0x94   : > { %s609_s13 = smov 128   ;;  %s610_s5 = smov 8  }
  0x95   : > { %396 = dma.vmem_to_hbm [thread:$0]  (%p764_p3), %s293_s23, 256, %s800_s4, [#allocation8], %s609_s13, %s609_s13, %s610_s5  }
  0x96   : > { %573 = dma.done.wait (%p764_p3), [#allocation8], 256  }
  0x97   : > { %575 = vsyncadd (%p764_p3), [#allocation8], 4294967040 }
  0x98 PF: > { %s29_s29 = sadd.s32 1, %s598_s29   ;;  %s811_s2 = smov %s582_s25 }
  0x99   : > { %p26_p1 = scmp.ge.s32.totalorder %s29_s29, 5   ;;  %s812_s25 = smov %s586_s26 }
  0x9a   : > { %s813_s26 = smov %s697_s15  ;;  %s814_s27 = smov %s594_s28 }
  0x9b   : > { %s815_s28 = smov %s817_s30  ;;  %28 = sbr.rel (!%p26_p1) target bundleno = 31 (0x1f), region = 73 }
  0xa0   :  { %308 = vsyncpa [#allocation7], 1 }
  0xa1   :  { %310 = vsyncpa [#allocation7 + $0x1], 1 }
  0xa2   :  { %311 = vsyncpa [#allocation8], 1 }
  0xa3   :  { %313 = vsyncpa [#allocation8 + $0x1], 1 }

</bundles_post_ra>
